<compile_context>
chip_gen: v6e
topology: v6e:2x2x1
jax: 0.10.0
libtpu: 0.0.40
codegen_flags: <defaults>
</compile_context>

<pallas_src>
import jax
import jax.numpy as jnp
from jax.experimental import pallas as pl
from jax.experimental.pallas import tpu as pltpu


def _yuv_to_rgb_kernel(x_ref, o_ref):
    # Block shapes: (1, 3, S_blk, L).  Channel axis 1 holds (Y, U, V) planes.
    y = x_ref[0, 0, :, :]
    u = x_ref[0, 1, :, :]
    v = x_ref[0, 2, :, :]

    # Weak-typed Python float constants: no promotion if x is bf16.
    o_ref[0, 0, :, :] = y + 1.14 * v                    # R
    o_ref[0, 1, :, :] = y + (-0.396) * u - 0.581 * v    # G
    o_ref[0, 2, :, :] = y + 2.029 * u                   # B


def _choose_layout(n):
    """Factor n = S * L with L a multiple of 128 (lane-dense) when possible."""
    for cand in (1024, 512, 256, 128):
        if n % cand == 0:
            return n // cand, cand
    # Fallback (n not divisible by 128): single full-extent lane row (masked stores,
    # still better than tiny W on the lane axis).
    return 1, n


def yuv_to_rgb(x):
    """Pallas TPU implementation of YUVToRGB.forward (NCHW, chunk along dim=-3)."""
    B, C, H, W = x.shape
    assert C % 3 == 0, "channel dim must be divisible by 3 (Y/U/V chunks)"
    c3 = C // 3
    N = c3 * H * W  # elements per Y/U/V plane per batch element

    S, L = _choose_layout(N)

    # Pure reshape: in NCHW each of the Y/U/V channel chunks is a contiguous
    # c3*H*W slab per batch element, so (B, C, H, W) -> (B, 3, S, L) is exact.
    x4 = x.reshape(B, 3, S, L)

    # ~128K elements per (S_blk, L) block => ~1.5 MiB/direction (f32), ~6 MiB total
    # with in+out double buffering -> safe on v5e/v6e (128 MiB VMEM) and v7x (64 MiB).
    target_elems = 128 * 1024
    sblk_target = max(8, target_elems // L)
    if S <= sblk_target:
        S_blk = S                       # full extent (always legal)
    else:
        S_blk = (sblk_target // 8) * 8  # multiple of 8 for (8,128) tiling
    grid_s = pl.cdiv(S, S_blk)          # boundary blocks are masked by Pallas

    out4 = pl.pallas_call(
        _yuv_to_rgb_kernel,
        out_shape=jax.ShapeDtypeStruct((B, 3, S, L), x.dtype),
        grid_spec=pltpu.PrefetchScalarGridSpec(
            num_scalar_prefetch=0,
            grid=(B, grid_s),
            in_specs=[pl.BlockSpec((1, 3, S_blk, L), lambda b, s: (b, 0, s, 0))],
            out_specs=pl.BlockSpec((1, 3, S_blk, L), lambda b, s: (b, 0, s, 0)),
        ),
        compiler_params=pltpu.CompilerParams(
            dimension_semantics=("parallel", "parallel"),
            vmem_limit_bytes=32 * 1024 * 1024,
        ),
    )(x4)

    return out4.reshape(B, C, H, W)


def yuv_to_rgb_ref(x):
    # Pure-JAX reference mirroring the PyTorch module.
    y, u, v = jnp.split(x, 3, axis=-3)
    r = y + 1.14 * v
    g = y + (-0.396) * u - 0.581 * v
    b = y + 2.029 * u
    return jnp.concatenate((r, g, b), axis=-3)


if __name__ == "__main__":
    key = jax.random.PRNGKey(0)

    # Standard 3-channel YUV image, NCHW.
    B, C, H, W = 2, 3, 16, 16
    x = jax.random.normal(key, (B, C, H, W), dtype=jnp.float32)
    out = jax.block_until_ready(yuv_to_rgb(x))
    ref = yuv_to_rgb_ref(x)
    assert out.shape == ref.shape
    assert jnp.allclose(out, ref, atol=1e-5, rtol=1e-5)

    # Multi-chunk case (C = 6 -> c3 = 2), exercises the flattened-plane layout.
    x2 = jax.random.normal(jax.random.PRNGKey(1), (1, 6, 8, 16), dtype=jnp.float32)
    out2 = jax.block_until_ready(yuv_to_rgb(x2))
    ref2 = yuv_to_rgb_ref(x2)
    assert jnp.allclose(out2, ref2, atol=1e-5, rtol=1e-5)

    print("KERNEL_OK")
</pallas_src>

<mosaic_0001>
module attributes {stable_mosaic.version = 11 : i64} {
  func.func @_yuv_to_rgb_kernel(%arg0: i32, %arg1: i32, %arg2: memref<1x3x1x256xf32, #tpu.memory_space<vmem>>, %arg3: memref<1x3x1x256xf32, #tpu.memory_space<vmem>>) attributes {dimension_semantics = [#tpu.dimension_semantics<parallel>, #tpu.dimension_semantics<parallel>], iteration_bounds = array<i64: 2, 1>, scalar_prefetch = 0 : i64, scratch_operands = 0 : i64, tpu.core_type = #tpu.core_type<tc>, window_params = [{transform_indices = @transform_0, window_bounds = array<i64: 1, 3, 1, 256>}, {transform_indices = @transform_1, window_bounds = array<i64: 1, 3, 1, 256>}]} {
    %c0 = arith.constant 0 : index
    %c0_0 = arith.constant 0 : index
    %c0_1 = arith.constant 0 : index
    %c0_2 = arith.constant 0 : index
    %0 = vector.load %arg2[%c0, %c0_0, %c0_1, %c0_2] : memref<1x3x1x256xf32, #tpu.memory_space<vmem>>, vector<1x1x1x256xf32>
    %1 = vector.shape_cast %0 : vector<1x1x1x256xf32> to vector<1x256xf32>
    %c0_3 = arith.constant 0 : index
    %c1 = arith.constant 1 : index
    %c0_4 = arith.constant 0 : index
    %c0_5 = arith.constant 0 : index
    %2 = vector.load %arg2[%c0_3, %c1, %c0_4, %c0_5] : memref<1x3x1x256xf32, #tpu.memory_space<vmem>>, vector<1x1x1x256xf32>
    %3 = vector.shape_cast %2 : vector<1x1x1x256xf32> to vector<1x256xf32>
    %c0_6 = arith.constant 0 : index
    %c2 = arith.constant 2 : index
    %c0_7 = arith.constant 0 : index
    %c0_8 = arith.constant 0 : index
    %4 = vector.load %arg2[%c0_6, %c2, %c0_7, %c0_8] : memref<1x3x1x256xf32, #tpu.memory_space<vmem>>, vector<1x1x1x256xf32>
    %5 = vector.shape_cast %4 : vector<1x1x1x256xf32> to vector<1x256xf32>
    %cst = arith.constant 1.140000e+00 : f32
    %6 = vector.broadcast %cst : f32 to vector<1x256xf32>
    %7 = arith.mulf %6, %5 : vector<1x256xf32>
    %8 = arith.addf %1, %7 : vector<1x256xf32>
    %c0_9 = arith.constant 0 : index
    %c0_10 = arith.constant 0 : index
    %c0_11 = arith.constant 0 : index
    %c0_12 = arith.constant 0 : index
    %9 = vector.load %arg3[%c0_9, %c0_10, %c0_11, %c0_12] : memref<1x3x1x256xf32, #tpu.memory_space<vmem>>, vector<1x1x1x256xf32>
    %10 = vector.shape_cast %9 : vector<1x1x1x256xf32> to vector<1x256xf32>
    %11 = vector.shape_cast %8 : vector<1x256xf32> to vector<1x1x1x256xf32>
    tpu.vector_store %arg3[%c0_9, %c0_10, %c0_11, %c0_12], %11 {strides = array<i32>} : memref<1x3x1x256xf32, #tpu.memory_space<vmem>>, vector<1x1x1x256xf32>,
    %cst_13 = arith.constant -3.960000e-01 : f32
    %12 = vector.broadcast %cst_13 : f32 to vector<1x256xf32>
    %13 = arith.mulf %12, %3 : vector<1x256xf32>
    %14 = arith.addf %1, %13 : vector<1x256xf32>
    %cst_14 = arith.constant 5.810000e-01 : f32
    %15 = vector.broadcast %cst_14 : f32 to vector<1x256xf32>
    %16 = arith.mulf %15, %5 : vector<1x256xf32>
    %17 = arith.subf %14, %16 : vector<1x256xf32>
    %c0_15 = arith.constant 0 : index
    %c1_16 = arith.constant 1 : index
    %c0_17 = arith.constant 0 : index
    %c0_18 = arith.constant 0 : index
    %18 = vector.load %arg3[%c0_15, %c1_16, %c0_17, %c0_18] : memref<1x3x1x256xf32, #tpu.memory_space<vmem>>, vector<1x1x1x256xf32>
    %19 = vector.shape_cast %18 : vector<1x1x1x256xf32> to vector<1x256xf32>
    %20 = vector.shape_cast %17 : vector<1x256xf32> to vector<1x1x1x256xf32>
    tpu.vector_store %arg3[%c0_15, %c1_16, %c0_17, %c0_18], %20 {strides = array<i32>} : memref<1x3x1x256xf32, #tpu.memory_space<vmem>>, vector<1x1x1x256xf32>,
    %cst_19 = arith.constant 2.029000e+00 : f32
    %21 = vector.broadcast %cst_19 : f32 to vector<1x256xf32>
    %22 = arith.mulf %21, %3 : vector<1x256xf32>
    %23 = arith.addf %1, %22 : vector<1x256xf32>
    %c0_20 = arith.constant 0 : index
    %c2_21 = arith.constant 2 : index
    %c0_22 = arith.constant 0 : index
    %c0_23 = arith.constant 0 : index
    %24 = vector.load %arg3[%c0_20, %c2_21, %c0_22, %c0_23] : memref<1x3x1x256xf32, #tpu.memory_space<vmem>>, vector<1x1x1x256xf32>
    %25 = vector.shape_cast %24 : vector<1x1x1x256xf32> to vector<1x256xf32>
    %26 = vector.shape_cast %23 : vector<1x256xf32> to vector<1x1x1x256xf32>
    tpu.vector_store %arg3[%c0_20, %c2_21, %c0_22, %c0_23], %26 {strides = array<i32>} : memref<1x3x1x256xf32, #tpu.memory_space<vmem>>, vector<1x1x1x256xf32>,
    return
  }
  func.func @transform_0(%arg0: i32, %arg1: i32) -> (i32, i32, i32, i32) {
    %c0_i32 = arith.constant 0 : i32
    %c0_i32_0 = arith.constant 0 : i32
    %c0_i32_1 = arith.constant 0 : i32
    return %arg0, %c0_i32, %arg1, %c0_i32_0 : i32, i32, i32, i32
  }
  func.func @transform_1(%arg0: i32, %arg1: i32) -> (i32, i32, i32, i32) {
    %c0_i32 = arith.constant 0 : i32
    %c0_i32_0 = arith.constant 0 : i32
    %c0_i32_1 = arith.constant 0 : i32
    return %arg0, %c0_i32, %arg1, %c0_i32_0 : i32, i32, i32, i32
  }
}

</mosaic_0001>

<bundles_post_ra>
// kernel: tpu_custom_call.1
= control target key start
LH: loop header
LB: loop body
LE: loop exit
PB: predicated region body
PF: predicated region fallthrough
CT: control target
= control target key end

     0   :  { %6 = vsyncpa [#allocation3], 0  ;;  %s633_s0 = inlined_call_operand.hbm [shape: f32[2,3,1,256], index: 0, kind: input, shape index: {}]   ;;  %s634_s1 = inlined_call_operand.hbm [shape: f32[2,3,1,256], index: 1, kind: output, shape index: {}]  }
   0x1   :  { %8 = vsyncpa [#allocation3 + $0x1], 0 }
   0x2   :  { %9 = vsyncpa [#allocation4], 0 }
   0x3   :  { %11 = vsyncpa [#allocation4 + $0x1], 0  ;;  %s487_s6 = smov 0   ;;  %s489_s7 = smov 0  }
   0x4   :  { %s491_s8 = smov 0   ;;  %s493_s9 = smov 0  }
   0x5   :  { %s495_s10 = smov 0   ;;  %s497_s11 = smov 0  }
   0x6 LB: > { %s278_s12 = sadd.s32 4294967295, %s469_s11   ;;  %s279_s13 = sadd.s32 4294967294, %s469_s11   ;;  %s469_s11 = sphi %s497_s11, %s17_s11   ;;  %s465_s10 = sphi %s495_s10, %s645_s10   ;;  %s461_s9 = sphi %s493_s9, %s644_s9   ;;  %s457_s8 = sphi %s491_s8, %s643_s8   ;;  %s453_s7 = sphi %s489_s7, %s642_s7   ;;  %s449_s6 = sphi %s487_s6, %s641_s6  }
   0x7   : > { %s29_s14 = sadd.s32 1, %s465_s10  ;;  %s38_s15 = sadd.s32 1, %s457_s8 }
   0x8   : > { %p31_p0 = scmp.ge.s32.totalorder %s29_s14, 2  ;;  %p45_p1 = scmp.ne.s32.totalorder %s457_s8, %s453_s7 }
   0x9   : > { %p46_p2 = scmp.eq.s32.totalorder %s469_s11, 0  ;;  %p51_p3 = scmp.ne.s32.totalorder %s453_s7, %s449_s6 }
   0xa   : > { %s647_s14 = smov (%p31_p0, %s29_s14), 0  ;;  %p52_p5 = scmp.eq.s32.totalorder %s278_s12, 0 }
   0xb   : > { %p528_p4 = por %p46_p2, %p45_p1  ;;  %s33_s17 = ssub.s32 %s465_s10, %s647_s14 }
   0xc   : > { %p77_p6 = scmp.eq.s32.totalorder %s278_s12, 1  ;;  %p36_p7 = scmp.eq.s32.totalorder %s33_s17, 0 }
   0xd   : > { %p534_p8 = por %p52_p5, %p51_p3  ;;  %p83_p10 = scmp.eq.s32.totalorder %s279_s13, 1 }
   0xe   : > { %p538_p9 = por %p77_p6, %p45_p1  ;;  %p307_p13 = scmp.lt.s32.totalorder %s469_s11, 2 }
   0xf   : > { %s543_s20 = scalar_select %p36_p7, %s457_s8, %s38_s15  }
  0x10   : > { %p545_p11 = por %p83_p10, %p51_p3  ;;  %s103_s22 = sand.u32 1, %s457_s8  }
  0x11   : > { %s291_s23 = smul.u32 6, %s103_s22  ;;  %p555_p0 = pnand %p307_p13, %p528_p4 }
  0x12   : > { %s292_s24 = smul.u32 96, %s465_s10  ;;  %p283_p1 = scmp.ge.s32.totalorder %s469_s11, 1 }
  0x13   : > { %s107_s29 = scalar_lea.vmem [#allocation2], %s291_s23  ;;  %s104_s2 = scalar_lea.sflag [#allocation3], %s103_s22 }
  0x14   : > { %s115_s28 = scalar_lea.hbm %s633_s0, %s292_s24  ;;  %s116_s30 = sshll.u32 %s107_s29, 4  ;;  %s117_s30 = int_to_ptr.vmem [resolvable:$true] %s116_s30 }
  0x15   : > { %p363_p2 = pneg %p555_p0  ;;  %s374_s3 = scalar_lea.vmem %s117_s30, 96 }
  0x16   : > { %p375_p3 = scmp.ne.s32.totalorder %s117_s30, %s374_s3  ;;  %s471_s4 = smov [#allocation2]  }
  0x17   : > { %s379_s5 = sshll.u32 %s471_s4, 4  ;;  %s380_s5 = int_to_ptr.vmem [resolvable:$false] %s379_s5 }
  0x18   : > { %p377_p5 = pnand %p375_p3, %p363_p2  ;;  %s381_s12 = scalar_lea.vmem %s380_s5, 192 }
  0x19   : > { %p382_p4 = scmp.lt.s32.totalorder %s117_s30, %s380_s5  ;;  %p383_p7 = scmp.lt.s32.totalorder %s381_s12, %s374_s3 }
  0x1a   : > { %p378_p6 = pneg %p377_p5 }
  0x1b   : > { %p384_p10 = por %p383_p7, %p382_p4 }
  0x1d   : > { %p385_p13 = pnand %p384_p10, %p378_p6 }
  0x1f   : > { %388 = shalt.err (!%p385_p13)
}
  0x20   : > { %s472_s13 = smov 32   ;;  %s473_s15 = smov 2  }
  0x21   : > { %302 = dma.hbm_to_vmem [thread:$0]  (!%p555_p0), %s115_s28, 96, %s117_s30, %s104_s2, %s472_s13, %s472_s13, %s473_s15  }
  0x22   : > { %p124_p12 = scmp.lt.s32.totalorder %s469_s11, 3 }
  0x24   : > { %p125_p2 = pnand %p283_p1, %p124_p12 }
  0x25   : > { %s571_s16 = sand.u32 (!%p125_p2), 1, %s453_s7  }
  0x26   : > { %128 = sbr.rel (%p125_p2) target bundleno = 69 (0x45), region = 24  ;;  %s131_s22 = scalar_lea.sflag (!%p125_p2), [#allocation3], %s571_s16 }
  0x27   : > { %s293_s17 = smul.u32 (!%p125_p2), 6, %s571_s16 }
  0x29   : > { %s134_s23 = scalar_lea.vmem (!%p125_p2), [#allocation2], %s293_s17 }
  0x2b   : > { %440 = dma.done.wait (%p534_p8), %s131_s22, 96  }
  0x2c   : > { %442 = vsyncadd (%p534_p8), %s131_s22, 4294967200  ;;  %v160_v0 = vlaneseq  ;;  %s152_s24 = scalar_lea.vmem [#allocation5], %s293_s17  ;;  %s294_s26 = smul.u32 96, %s461_s9  ;;  %v153_v1 = vld [vmem:[%s134_s23] sm:$0x3] }
  0x2d   : > { %s191_s25 = sshll.u32 %s152_s24, 4  ;;  %v285_v2 = vld [vmem:[%s134_s23 + $0x4] sm:$0x3]  ;;  %v284_v3 = vld [vmem:[%s134_s23 + $0x2] sm:$0x3]  ;;  %s176_s28 = scalar_lea.sflag [#allocation4], %s571_s16  ;;  %s580_s25 = int_to_ptr.vmem [resolvable:$true] %s191_s25 }
  0x2e   : > { %v158_v4 = vmul.f32 1.14, %v285_v2  ;;  %v165_v5 = vmul.f32 -0.396, %v284_v3  ;;  %v167_v6 = vmul.f32 0.581, %v285_v2  ;;  %s585_s27 = scalar_lea.hbm %s634_s1, %s294_s26 }
  0x2f   : > { %vm162_vm0 = vcmp.lt.s32.totalorder %v160_v0, 256  ;;  %v171_v7 = vmul.f32 2.029, %v284_v3  ;;  %s389_s29 = scalar_lea.vmem %s580_s25, 96  ;;  %s474_s30 = smov [#allocation5]  }
  0x30   : > { %v159_v8 = vadd.f32 %v158_v4, %v153_v1  ;;  %v166_v9 = vadd.f32 %v165_v5, %v153_v1  ;;  %p390_p8 = scmp.ne.s32.totalorder %s580_s25, %s389_s29  ;;  %s393_s2 = sshll.u32 %s474_s30, 4  ;;  %s394_s2 = int_to_ptr.vmem [resolvable:$false] %s393_s2 }
  0x31   : > { %v172_v10 = vadd.f32 %v171_v7, %v153_v1  ;;  %s395_s3 = scalar_lea.vmem %s394_s2, 192  ;;  %p396_p1 = scmp.lt.s32.totalorder %s580_s25, %s394_s2 }
  0x32   : > { %164 = vst.msk [vmem:[%s152_s24] sm:$0x3] %vm162_vm0, %v159_v8  ;;  %v168_v11 = vsub.f32 %v166_v9, %v167_v6  ;;  %p391_p12 = pnand %p390_p8, %p538_p9  ;;  %p397_p3 = scmp.lt.s32.totalorder %s395_s3, %s389_s29 }
  0x33   : > { %287 = vst.msk [vmem:[%s152_s24 + $0x4] sm:$0x3] %vm162_vm0, %v172_v10 }
  0x34   : > { %286 = vst.msk [vmem:[%s152_s24 + $0x2] sm:$0x3] %vm162_vm0, %v168_v11  ;;  %p392_p0 = pneg %p391_p12  ;;  %p398_p5 = por %p397_p3, %p396_p1 }
  0x36   : > { %p399_p6 = pnand %p398_p5, %p392_p0 }
  0x38   : > { %402 = shalt.err (!%p399_p6)
}
  0x39   : > { %s403_s4 = scalar_lea.hbm %s585_s27, 96  ;;  %s407_s13 = scalar_lea.hbm %s634_s1, 192 }
  0x3a   : > { %p404_p4 = scmp.ne.s32.totalorder %s585_s27, %s403_s4  ;;  %p408_p13 = scmp.lt.s32.totalorder %s585_s27, %s634_s1 }
  0x3b   : > { %p409_p2 = scmp.lt.s32.totalorder %s407_s13, %s403_s4 }
  0x3c   : > { %p405_p7 = pnand %p404_p4, %p538_p9 }
  0x3d   : > { %p410_p8 = por %p409_p2, %p408_p13 }
  0x3e   : > { %p406_p10 = pneg %p405_p7 }
  0x40   : > { %p411_p12 = pnand %p410_p8, %p406_p10 }
  0x42   : > { %414 = shalt.err (!%p411_p12)
}
  0x43   : > { %s475_s22 = smov 32   ;;  %s476_s23 = smov 2  }
  0x44   : > { %297 = dma.vmem_to_hbm [thread:$0]  (%p538_p9), %s580_s25, 96, %s585_s27, %s176_s28, %s475_s22, %s475_s22, %s476_s23  }
  0x45 PF: > { %s206_s24 = sand.u32 1, %s449_s6   ;;  %p640_p0 = scmp.ge.s32.totalorder %s469_s11, 2 }
  0x46   : > { %s207_s26 = scalar_lea.sflag [#allocation4], %s206_s24 }
  0x47   : > { %p304_p1 = pnand %p640_p0, %p545_p11 }
  0x49   : > { %p305_p3 = pneg %p304_p1 }
  0x4b   : > { %444 = dma.done.wait (%p305_p3), %s207_s26, 96  }
  0x4c   : > { %446 = vsyncadd (%p305_p3), %s207_s26, 4294967200  ;;  %s17_s11 = sadd.s32 1, %s469_s11   ;;  %s641_s6 = smov %s453_s7 }
  0x4d   : > { %p14_p5 = scmp.ge.s32.totalorder %s17_s11, 4   ;;  %s642_s7 = smov %s457_s8 }
  0x4e   : > { %s643_s8 = smov %s543_s20  ;;  %s644_s9 = smov %s465_s10 }
  0x4f   : > { %s645_s10 = smov %s647_s14  ;;  %16 = sbr.rel (!%p14_p5) target bundleno = 6 (0x6), region = 73 }
  0x54   :  { %212 = vsyncpa [#allocation3], 1 }
  0x55   :  { %214 = vsyncpa [#allocation3 + $0x1], 1 }
  0x56   :  { %215 = vsyncpa [#allocation4], 1 }
  0x57   :  { %217 = vsyncpa [#allocation4 + $0x1], 1 }

</bundles_post_ra>
